<compile_context>
chip_gen: v6e
topology: v6e:2x2x1
jax: 0.10.0
libtpu: 0.0.40
codegen_flags: <defaults>
</compile_context>

<pallas_src>
import functools

import jax
import jax.numpy as jnp
from jax.experimental import pallas as pl
from jax.experimental.pallas import tpu as pltpu


def _transpose_kernel(x_ref, o_ref):
    """norm_layer=None path: pure (C, TL) -> (TL, C) transpose."""
    # x_ref: (1, C, TL)  ->  o_ref: (1, TL, C)
    o_ref[0] = x_ref[0].T.astype(o_ref.dtype)


def _transpose_layernorm_kernel(x_ref, g_ref, b_ref, o_ref, *, eps):
    """norm_layer=nn.LayerNorm path: fused transpose + LayerNorm(embed_dim)."""
    # x_ref: (1, C, TL), g_ref/b_ref: (1, C), o_ref: (1, TL, C)
    x = x_ref[0].astype(jnp.float32)                     # (C, TL), lanes = tokens
    mean = jnp.mean(x, axis=0, keepdims=True)            # (1, TL)  sublane reduce
    cent = x - mean
    var = jnp.mean(cent * cent, axis=0, keepdims=True)   # biased, like nn.LayerNorm
    xn = cent * jax.lax.rsqrt(var + eps)                 # still lane-dense (C, TL)
    xt = xn.T                                            # one XLU transpose -> (TL, C)
    out = xt * g_ref[...].astype(jnp.float32) + b_ref[...].astype(jnp.float32)
    o_ref[0] = out.astype(o_ref.dtype)


def _token_tile(L):
    """Largest lane-dense (multiple-of-128) tile that divides L, else full L."""
    for cand in (1024, 512, 256, 128):
        if L % cand == 0:
            return cand
    return L


def patch_embed_forward(x, norm_weight=None, norm_bias=None, eps=1e-5):
    """x: (B, C, H, W) -> (B, H*W, C); optional LayerNorm over C (PatchEmbed.norm)."""
    B, C, H, W = x.shape
    L = H * W
    TL = _token_tile(L)
    x3 = x.reshape(B, C, L)                      # contiguous reshape, no HBM copy

    grid = (B, L // TL)
    x_spec = pl.BlockSpec((1, C, TL), lambda b, l: (b, 0, l))
    o_spec = pl.BlockSpec((1, TL, C), lambda b, l: (b, l, 0))
    out_shape = jax.ShapeDtypeStruct((B, L, C), x.dtype)
    cparams = pltpu.CompilerParams(
        dimension_semantics=("parallel", "parallel"))

    if norm_weight is None:
        return pl.pallas_call(
            _transpose_kernel,
            out_shape=out_shape,
            grid_spec=pltpu.PrefetchScalarGridSpec(
                num_scalar_prefetch=0, grid=grid,
                in_specs=[x_spec], out_specs=o_spec),
            compiler_params=cparams,
        )(x3)

    g_row = norm_weight.reshape(1, C)
    b_row = norm_bias.reshape(1, C)
    p_spec = pl.BlockSpec((1, C), lambda b, l: (0, 0))   # resident across the grid
    kernel = functools.partial(_transpose_layernorm_kernel, eps=eps)
    return pl.pallas_call(
        kernel,
        out_shape=out_shape,
        grid_spec=pltpu.PrefetchScalarGridSpec(
            num_scalar_prefetch=0, grid=grid,
            in_specs=[x_spec, p_spec, p_spec], out_specs=o_spec),
        compiler_params=cparams,
    )(x3, g_row, b_row)


def _reference(x, norm_weight=None, norm_bias=None, eps=1e-5):
    """Pure-JAX reference of PatchEmbed.forward."""
    B, C, H, W = x.shape
    t = jnp.transpose(x.reshape(B, C, H * W), (0, 2, 1))   # (B, L, C)
    if norm_weight is not None:
        mean = jnp.mean(t, axis=-1, keepdims=True)
        var = jnp.mean(jnp.square(t - mean), axis=-1, keepdims=True)
        t = (t - mean) / jnp.sqrt(var + eps) * norm_weight + norm_bias
    return t


if __name__ == "__main__":
    key = jax.random.PRNGKey(0)
    B, C, H, W = 2, 32, 8, 16        # embed_dim=32, patches_resolution=(8, 16)
    k_x, k_g, k_b = jax.random.split(key, 3)
    x = jax.random.normal(k_x, (B, C, H, W), dtype=jnp.float32)
    gamma = 1.0 + 0.1 * jax.random.normal(k_g, (C,), dtype=jnp.float32)
    beta = 0.1 * jax.random.normal(k_b, (C,), dtype=jnp.float32)

    # Default PatchEmbed config (norm_layer=None): pure flatten + transpose.
    y_plain = patch_embed_forward(x)
    jax.block_until_ready(y_plain)
    assert y_plain.shape == (B, H * W, C)
    assert jnp.allclose(y_plain, _reference(x), atol=1e-6, rtol=1e-6), \
        "plain transpose mismatch vs reference"

    # norm_layer=nn.LayerNorm config: fused transpose + LayerNorm(embed_dim).
    y_norm = patch_embed_forward(x, gamma, beta)
    jax.block_until_ready(y_norm)
    assert jnp.allclose(y_norm, _reference(x, gamma, beta),
                        atol=1e-5, rtol=1e-5), "layernorm path mismatch vs reference"

    print("KERNEL_OK")
</pallas_src>

<mosaic_0001>
module attributes {stable_mosaic.version = 11 : i64} {
  func.func @_transpose_kernel(%arg0: i32, %arg1: i32, %arg2: memref<1x32x128xf32, #tpu.memory_space<vmem>>, %arg3: memref<1x128x32xf32, #tpu.memory_space<vmem>>) attributes {dimension_semantics = [#tpu.dimension_semantics<parallel>, #tpu.dimension_semantics<parallel>], iteration_bounds = array<i64: 2, 1>, scalar_prefetch = 0 : i64, scratch_operands = 0 : i64, tpu.core_type = #tpu.core_type<tc>, window_params = [{transform_indices = @transform_0, window_bounds = array<i64: 1, 32, 128>}, {transform_indices = @transform_1, window_bounds = array<i64: 1, 128, 32>}]} {
    %c0 = arith.constant 0 : index
    %c0_0 = arith.constant 0 : index
    %c0_1 = arith.constant 0 : index
    %0 = vector.load %arg2[%c0, %c0_0, %c0_1] : memref<1x32x128xf32, #tpu.memory_space<vmem>>, vector<1x32x128xf32>
    %1 = vector.shape_cast %0 : vector<1x32x128xf32> to vector<32x128xf32>
    %2 = tpu.transpose %1, [1, 0] : vector<32x128xf32> -> vector<128x32xf32>
    %c0_2 = arith.constant 0 : index
    %c0_3 = arith.constant 0 : index
    %c0_4 = arith.constant 0 : index
    %3 = vector.load %arg3[%c0_2, %c0_3, %c0_4] : memref<1x128x32xf32, #tpu.memory_space<vmem>>, vector<1x128x32xf32>
    %4 = vector.shape_cast %3 : vector<1x128x32xf32> to vector<128x32xf32>
    %5 = vector.shape_cast %2 : vector<128x32xf32> to vector<1x128x32xf32>
    tpu.vector_store %arg3[%c0_2, %c0_3, %c0_4], %5 {strides = array<i32>} : memref<1x128x32xf32, #tpu.memory_space<vmem>>, vector<1x128x32xf32>,
    return
  }
  func.func @transform_0(%arg0: i32, %arg1: i32) -> (i32, i32, i32) {
    %c0_i32 = arith.constant 0 : i32
    %c0_i32_0 = arith.constant 0 : i32
    return %arg0, %c0_i32, %arg1 : i32, i32, i32
  }
  func.func @transform_1(%arg0: i32, %arg1: i32) -> (i32, i32, i32) {
    %c0_i32 = arith.constant 0 : i32
    %c0_i32_0 = arith.constant 0 : i32
    return %arg0, %arg1, %c0_i32 : i32, i32, i32
  }
}

</mosaic_0001>

<bundles_post_ra>
// kernel: tpu_custom_call.1
= control target key start
LH: loop header
LB: loop body
LE: loop exit
PB: predicated region body
PF: predicated region fallthrough
CT: control target
= control target key end

     0   :  { %6 = vsyncpa [#allocation3], 0  ;;  %s606_s0 = inlined_call_operand.hbm [shape: f32[2,32,128], index: 0, kind: input, shape index: {}]   ;;  %s607_s1 = inlined_call_operand.vmem [shape: f32[2,128,32], index: 1, kind: output, shape index: {}]  }
   0x1   :  { %8 = vsyncpa [#allocation3 + $0x1], 0  ;;  %s476_s6 = smov 0   ;;  %s478_s7 = smov 0  }
   0x2   :  { %s480_s8 = smov 0   ;;  %s482_s9 = smov 0  }
   0x3   :  { %s484_s10 = smov 0   ;;  %s486_s11 = smov 0  }
   0x4 LB: > { %s310_s12 = sadd.s32 4294967295, %s461_s11   ;;  %s26_s13 = sadd.s32 1, %s457_s10  ;;  %s461_s11 = sphi %s486_s11, %s14_s11   ;;  %s457_s10 = sphi %s484_s10, %s615_s10   ;;  %s453_s9 = sphi %s482_s9, %s614_s9   ;;  %s449_s8 = sphi %s480_s8, %s613_s8   ;;  %s445_s7 = sphi %s478_s7, %s612_s7   ;;  %s441_s6 = sphi %s476_s6, %s611_s6  }
   0x5   : > { %p28_p0 = scmp.ge.s32.totalorder %s26_s13, 2  ;;  %s35_s14 = sadd.s32 1, %s449_s8 }
   0x6   : > { %p42_p1 = scmp.ne.s32.totalorder %s449_s8, %s445_s7  ;;  %p43_p2 = scmp.eq.s32.totalorder %s461_s11, 0 }
   0x7   : > { %s617_s13 = smov (%p28_p0, %s26_s13), 0  ;;  %p48_p4 = scmp.ne.s32.totalorder %s445_s7, %s441_s6 }
   0x8   : > { %p512_p3 = por %p43_p2, %p42_p1  ;;  %s30_s16 = ssub.s32 %s457_s10, %s617_s13 }
   0x9   : > { %p49_p5 = scmp.eq.s32.totalorder %s310_s12, 0  ;;  %p33_p6 = scmp.eq.s32.totalorder %s30_s16, 0 }
   0xa   : > { %p331_p8 = scmp.lt.s32.totalorder %s461_s11, 2  ;;  %s100_s19 = sand.u32 1, %s449_s8  }
   0xb   : > { %p519_p7 = por %p49_p5, %p48_p4  ;;  %s323_s20 = sshll.u32 %s457_s10, 9 }
   0xc   : > { %s525_s18 = scalar_select %p33_p6, %s449_s8, %s35_s14  }
   0xd   : > { %s314_s21 = sshll.u32 %s100_s19, 5  ;;  %s111_s24 = scalar_lea.hbm %s606_s0, %s323_s20 }
   0xe   : > { %s104_s25 = scalar_lea.vmem [#allocation2], %s314_s21  ;;  %p534_p9 = pnand %p331_p8, %p512_p3 }
   0xf   : > { %s112_s26 = sshll.u32 %s104_s25, 4  ;;  %s101_s28 = scalar_lea.sflag [#allocation3], %s100_s19  ;;  %s113_s26 = int_to_ptr.vmem [resolvable:$true] %s112_s26 }
  0x10   : > { %p385_p10 = pneg %p534_p9  ;;  %s396_s29 = scalar_lea.vmem %s113_s26, 512 }
  0x11   : > { %p397_p11 = scmp.ne.s32.totalorder %s113_s26, %s396_s29  ;;  %s463_s30 = smov [#allocation2]  }
  0x12   : > { %s401_s2 = sshll.u32 %s463_s30, 4  ;;  %s402_s2 = int_to_ptr.vmem [resolvable:$false] %s401_s2 }
  0x13   : > { %p399_p12 = pnand %p397_p11, %p385_p10  ;;  %s403_s3 = scalar_lea.vmem %s402_s2, 1024 }
  0x14   : > { %p404_p0 = scmp.lt.s32.totalorder %s113_s26, %s402_s2  ;;  %p405_p1 = scmp.lt.s32.totalorder %s403_s3, %s396_s29 }
  0x15   : > { %p400_p13 = pneg %p399_p12 }
  0x16   : > { %p406_p2 = por %p405_p1, %p404_p0 }
  0x18   : > { %p407_p3 = pnand %p406_p2, %p400_p13 }
  0x1a   : > { %410 = shalt.err (!%p407_p3)
}
  0x1b   : > { %s464_s4 = smov 128   ;;  %s465_s5 = smov 8  }
  0x1c   : > { %330 = dma.hbm_to_vmem [thread:$0]  (!%p534_p9), %s111_s24, 512, %s113_s26, %s101_s28, %s464_s4, %s464_s4, %s465_s5  }
  0x1d   : > { %p317_p4 = scmp.ge.s32.totalorder %s461_s11, 1  ;;  %p120_p5 = scmp.lt.s32.totalorder %s461_s11, 3 }
  0x1f   : > { %p121_p6 = pnand %p317_p4, %p120_p5 }
  0x20   : > { %s126_s6 = sand.u32 (!%p121_p6), 1, %s445_s7  }
  0x21   : > { %124 = sbr.rel (%p121_p6) target bundleno = 226 (0xe2), region = 24  ;;  %s318_s12 = sshll.u32 (!%p121_p6), %s126_s6, 5 }
  0x22   : > { %s127_s14 = scalar_lea.sflag (!%p121_p6), [#allocation3], %s126_s6  ;;  %s130_s15 = scalar_lea.vmem (!%p121_p6), [#allocation2], %s318_s12 }
  0x26   : > { %436 = dma.done.wait (%p519_p7), %s127_s14, 512  }
  0x27   : > { %438 = vsyncadd (%p519_p7), %s127_s14, 4294966784  ;;  %v163_v0 = vld [vmem:[%s130_s15] sm:$0xff]  ;;  %v164_v1 = vld [vmem:[%s130_s15 + $0x8] sm:$0xff]  ;;  %p154_p8 = scmp.lt.s32.totalorder %s453_s9, 1  ;;  %vm199_vm0 = vcmask 261120  }
  0x28   : > { %167 = vxpose.xlu0.b32.start [1/4] (short) %v163_v0, 128  ;;  %v165_v2 = vld [vmem:[%s130_s15 + $0x10] sm:$0xff]  ;;  %v166_v3 = vld [vmem:[%s130_s15 + $0x18] sm:$0xff] }
  0x29   : > { %s619_s9 = smov (!%p154_p8, %s453_s9), 1 }
  0x2a   : > { %s324_s16 = sshll.u32 %s619_s9, 7 }
  0x2b   : > { %s554_s21 = scalar_lea.vmem %s607_s1, %s324_s16 }
  0x2c   : > { %168 = vxpose.xlu0.b32.cont [2/4] (short) %v164_v1, 128 }
  0x30   : > { %169 = vxpose.xlu0.b32.cont [3/4] (short) %v165_v2, 128 }
  0x34   : > { %170 = vxpose.xlu0.b32.end [4/4] (short) %v166_v3, 128 }
  0xa4   : > { %v183_v4 = vpop.trf.xlu0 }
  0xa5   : > { %200 = vst.msk [vmem:[%s554_s21] sm:$0xff] %vm199_vm0, %v183_v4 }
  0xa8   : > { %v184_v5 = vpop.trf.xlu0 }
  0xa9   : > { %201 = vst.msk [vmem:[%s554_s21 + $0x8] sm:$0xff] %vm199_vm0, %v184_v5 }
  0xac   : > { %v185_v6 = vpop.trf.xlu0 }
  0xad   : > { %202 = vst.msk [vmem:[%s554_s21 + $0x10] sm:$0xff] %vm199_vm0, %v185_v6 }
  0xb0   : > { %v186_v7 = vpop.trf.xlu0 }
  0xb1   : > { %203 = vst.msk [vmem:[%s554_s21 + $0x18] sm:$0xff] %vm199_vm0, %v186_v7 }
  0xb4   : > { %v187_v8 = vpop.trf.xlu0 }
  0xb5   : > { %204 = vst.msk [vmem:[%s554_s21 + $0x20] sm:$0xff] %vm199_vm0, %v187_v8 }
  0xb8   : > { %v188_v9 = vpop.trf.xlu0 }
  0xb9   : > { %205 = vst.msk [vmem:[%s554_s21 + $0x28] sm:$0xff] %vm199_vm0, %v188_v9 }
  0xbc   : > { %v189_v10 = vpop.trf.xlu0 }
  0xbd   : > { %206 = vst.msk [vmem:[%s554_s21 + $0x30] sm:$0xff] %vm199_vm0, %v189_v10 }
  0xc0   : > { %v190_v11 = vpop.trf.xlu0 }
  0xc1   : > { %207 = vst.msk [vmem:[%s554_s21 + $0x38] sm:$0xff] %vm199_vm0, %v190_v11 }
  0xc4   : > { %v191_v12 = vpop.trf.xlu0 }
  0xc5   : > { %208 = vst.msk [vmem:[%s554_s21 + $0x40] sm:$0xff] %vm199_vm0, %v191_v12 }
  0xc8   : > { %v192_v13 = vpop.trf.xlu0 }
  0xc9   : > { %209 = vst.msk [vmem:[%s554_s21 + $0x48] sm:$0xff] %vm199_vm0, %v192_v13 }
  0xcc   : > { %v193_v14 = vpop.trf.xlu0 }
  0xcd   : > { %210 = vst.msk [vmem:[%s554_s21 + $0x50] sm:$0xff] %vm199_vm0, %v193_v14 }
  0xd0   : > { %v194_v15 = vpop.trf.xlu0 }
  0xd1   : > { %211 = vst.msk [vmem:[%s554_s21 + $0x58] sm:$0xff] %vm199_vm0, %v194_v15 }
  0xd4   : > { %v195_v16 = vpop.trf.xlu0 }
  0xd5   : > { %212 = vst.msk [vmem:[%s554_s21 + $0x60] sm:$0xff] %vm199_vm0, %v195_v16 }
  0xd8   : > { %v196_v17 = vpop.trf.xlu0 }
  0xd9   : > { %213 = vst.msk [vmem:[%s554_s21 + $0x68] sm:$0xff] %vm199_vm0, %v196_v17 }
  0xdc   : > { %v197_v18 = vpop.trf.xlu0 }
  0xdd   : > { %214 = vst.msk [vmem:[%s554_s21 + $0x70] sm:$0xff] %vm199_vm0, %v197_v18 }
  0xe0   : > { %v198_v19 = vpop.trf.xlu0 }
  0xe1   : > { %215 = vst.msk [vmem:[%s554_s21 + $0x78] sm:$0xff] %vm199_vm0, %v198_v19 }
  0xe2 PF: > { %s14_s11 = sadd.s32 1, %s461_s11   ;;  %s611_s6 = smov %s445_s7 }
  0xe3   : > { %p11_p7 = scmp.ge.s32.totalorder %s14_s11, 4   ;;  %s612_s7 = smov %s449_s8 }
  0xe4   : > { %s613_s8 = smov %s525_s18  ;;  %s614_s9 = smov %s457_s10 }
  0xe5   : > { %s615_s10 = smov %s617_s13  ;;  %13 = sbr.rel (!%p11_p7) target bundleno = 4 (0x4), region = 64 }
  0xea   :  { %246 = vsyncpa [#allocation3], 1 }
  0xeb   :  { %248 = vsyncpa [#allocation3 + $0x1], 1 }

</bundles_post_ra>
